<compile_context>
chip_gen: v7x
topology: tpu7x:2x2x1
jax: 0.10.0
libtpu: 0.0.40
codegen_flags: <defaults>
</compile_context>

<pallas_src>
import jax
import jax.numpy as jnp
from jax.experimental import pallas as pl
from jax.experimental.pallas import tpu as pltpu

EPS = 1e-5                      # nn.BatchNorm1d default eps
LANE = 128                      # TPU lane width
OUT_LANES = 128                 # lane-dense padded output width
VMEM_BUDGET = 32 * 1024 * 1024  # conservative scoped-VMEM budget (v7x-safe)


def _round_up(n, m):
    return (n + m - 1) // m * m


def actor_kernel(state_ref, w1_ref, g1_ref, b1_ref,
                 w2_hbm, g2_ref, b2_ref,
                 w3_hbm, b3_ref,
                 out_ref,
                 w2_vmem, w3_vmem, sem):
    # Kick off fc2/fc3 weight DMAs immediately so they overlap the fc1 matmul
    # + BN1 compute (w2 is the dominant transfer).
    cp_w2 = pltpu.make_async_copy(w2_hbm, w2_vmem, sem.at[0])
    cp_w3 = pltpu.make_async_copy(w3_hbm, w3_vmem, sem.at[1])
    cp_w2.start()
    cp_w3.start()

    # Activations go to bf16 right before each matmul (native MXU input);
    # accumulation and all BN statistics stay in f32.
    x = state_ref[...].astype(jnp.bfloat16)                               # (B, S)

    # ---- fc1 (no bias) + bn1 (batch stats, fused affine) + relu ----
    h1 = jnp.dot(x, w1_ref[...], preferred_element_type=jnp.float32)      # (B, F1P) f32
    mean1 = jnp.mean(h1, axis=0, keepdims=True)                           # (1, F1P)
    var1 = jnp.mean(jnp.square(h1 - mean1), axis=0, keepdims=True)        # biased, two-pass
    scale1 = g1_ref[...] * jax.lax.rsqrt(var1 + EPS)                      # (1, F1P)
    shift1 = b1_ref[...] - mean1 * scale1
    h1 = jnp.maximum(h1 * scale1 + shift1, 0.0)

    # ---- fc2 (no bias) + bn2 (batch stats, fused affine) + relu ----
    cp_w2.wait()                                                          # w2 hidden behind fc1/BN1
    h2 = jnp.dot(h1.astype(jnp.bfloat16), w2_vmem[...],
                 preferred_element_type=jnp.float32)                      # (B, F2P) f32
    mean2 = jnp.mean(h2, axis=0, keepdims=True)
    var2 = jnp.mean(jnp.square(h2 - mean2), axis=0, keepdims=True)
    scale2 = g2_ref[...] * jax.lax.rsqrt(var2 + EPS)
    shift2 = b2_ref[...] - mean2 * scale2
    h2 = jnp.maximum(h2 * scale2 + shift2, 0.0)

    # ---- fc3 (bias, zero-padded to 128 output lanes) + tanh ----
    cp_w3.wait()
    out = jnp.dot(h2.astype(jnp.bfloat16), w3_vmem[...],
                  preferred_element_type=jnp.float32) + b3_ref[...]       # (B, 128)
    out_ref[...] = jnp.tanh(out)                                          # lane-dense store


def actor_forward(state, params):
    """Run the Actor forward pass as a single gridless Pallas kernel."""
    B, S = state.shape
    F1P = params["w1"].shape[1]
    F2P = params["w2"].shape[1]
    A = params["action_size"]

    # VMEM budget sanity check: this gridless design keeps all activations and
    # weights resident.  Guard against learner-scale batches overrunning v7x's
    # smaller VMEM.
    est_vmem = (4 * B * (S + F1P + F2P + OUT_LANES)          # f32 activations / state / out
                + 2 * (params["w1"].size + params["w2"].size + params["w3"].size)
                + 4 * (2 * F1P + 2 * F2P + OUT_LANES))       # BN params + bias
    if est_vmem > VMEM_BUDGET:
        # TODO(synk): add a batch-tiled path with a cross-tile BN stat reduction
        raise ValueError("batch too large for the gridless VMEM-resident Actor kernel")

    args = (state,
            params["w1"], params["g1"], params["b1"],
            params["w2"], params["g2"], params["b2"],
            params["w3"], params["b3"])

    vmem_spec = pl.BlockSpec(memory_space=pltpu.MemorySpace.VMEM)
    any_spec = pl.BlockSpec(memory_space=pl.ANY)      # manual DMA inside the kernel
    in_specs = [vmem_spec,                            # state
                vmem_spec, vmem_spec, vmem_spec,      # w1, g1, b1
                any_spec, vmem_spec, vmem_spec,       # w2 (HBM), g2, b2
                any_spec, vmem_spec]                  # w3 (HBM), b3

    # Advisory cost estimate so XLA can overlap the (DMA-dominated) call.
    flops = 2 * B * (S * F1P + F1P * F2P + F2P * OUT_LANES) + 12 * B * (F1P + F2P)
    transcendentals = B * OUT_LANES + F1P + F2P       # tanh + rsqrt
    bytes_accessed = (sum(a.size * a.dtype.itemsize for a in args)
                      + B * OUT_LANES * 4)

    out = pl.pallas_call(
        actor_kernel,
        out_shape=jax.ShapeDtypeStruct((B, OUT_LANES), jnp.float32),
        in_specs=in_specs,
        out_specs=vmem_spec,
        scratch_shapes=[
            pltpu.VMEM((F1P, F2P), jnp.bfloat16),     # w2 landing buffer
            pltpu.VMEM((F2P, OUT_LANES), jnp.bfloat16),  # w3 landing buffer
            pltpu.SemaphoreType.DMA((2,)),
        ],
        compiler_params=pltpu.CompilerParams(vmem_limit_bytes=VMEM_BUDGET),
        cost_estimate=pl.CostEstimate(flops=flops,
                                      transcendentals=transcendentals,
                                      bytes_accessed=bytes_accessed),
    )(*args)
    return out[:, :A]


def init_actor_params(key, state_size, action_size, fc1_units=400, fc2_units=300):
    """Deterministic init mirroring Actor.reset_parameters() (limits, not torch RNG).

    All parameters are stored ONCE in their padded, kernel-ready layout:
      w1: (S, F1P) bf16   w2: (F1P, F2P) bf16   w3: (F2P, 128) bf16
      gamma/beta/bias: (1, padded) f32, zero on the padded lanes.
    Zero gamma on padded lanes keeps them exactly 0 through BN + ReLU, and
    zero fc3 bias padding keeps tanh(0) = 0 on the padded output lanes.
    """
    assert action_size <= OUT_LANES
    F1P = _round_up(fc1_units, LANE)
    F2P = _round_up(fc2_units, LANE)

    k1, k2, k3, k4 = jax.random.split(key, 4)
    lim1 = 1.0 / jnp.sqrt(jnp.float32(fc1_units))     # hidden_init uses weight.size(0)
    lim2 = 1.0 / jnp.sqrt(jnp.float32(fc2_units))
    lim3 = 0.003
    lim_b3 = 1.0 / jnp.sqrt(jnp.float32(fc2_units))   # torch default Linear bias init

    w1 = jax.random.uniform(k1, (state_size, fc1_units), jnp.float32, -lim1, lim1)
    w2 = jax.random.uniform(k2, (fc1_units, fc2_units), jnp.float32, -lim2, lim2)
    w3 = jax.random.uniform(k3, (fc2_units, action_size), jnp.float32, -lim3, lim3)
    b3 = jax.random.uniform(k4, (1, action_size), jnp.float32, -lim_b3, lim_b3)

    w1p = jnp.zeros((state_size, F1P), jnp.float32).at[:, :fc1_units].set(w1)
    w2p = jnp.zeros((F1P, F2P), jnp.float32).at[:fc1_units, :fc2_units].set(w2)
    w3p = jnp.zeros((F2P, OUT_LANES), jnp.float32).at[:fc2_units, :action_size].set(w3)
    b3p = jnp.zeros((1, OUT_LANES), jnp.float32).at[:, :action_size].set(b3)

    return {
        "w1": w1p.astype(jnp.bfloat16),
        "w2": w2p.astype(jnp.bfloat16),
        "w3": w3p.astype(jnp.bfloat16),
        "b3": b3p,
        # BatchNorm1d affine params (gamma=1, beta=0 on real lanes; 0 on pad)
        "g1": jnp.zeros((1, F1P), jnp.float32).at[:, :fc1_units].set(1.0),
        "b1": jnp.zeros((1, F1P), jnp.float32),
        "g2": jnp.zeros((1, F2P), jnp.float32).at[:, :fc2_units].set(1.0),
        "b2": jnp.zeros((1, F2P), jnp.float32),
        # static metadata
        "action_size": action_size,
        "fc1_units": fc1_units,
        "fc2_units": fc2_units,
    }


def actor_reference(state, p):
    """Pure-JAX f32 reference on the same (padded) bf16 weight values.

    Padded lanes stay exactly 0 through BN (gamma pad = 0) and contribute
    nothing to the next matmul (zero weight rows), so running the reference
    on the padded parameters is numerically identical to the unpadded model.
    """
    w1 = p["w1"].astype(jnp.float32)
    w2 = p["w2"].astype(jnp.float32)
    w3 = p["w3"].astype(jnp.float32)
    h1 = state @ w1
    m1 = h1.mean(0, keepdims=True)
    v1 = ((h1 - m1) ** 2).mean(0, keepdims=True)
    h1 = jnp.maximum((h1 - m1) / jnp.sqrt(v1 + EPS) * p["g1"] + p["b1"], 0.0)
    h2 = h1 @ w2
    m2 = h2.mean(0, keepdims=True)
    v2 = ((h2 - m2) ** 2).mean(0, keepdims=True)
    h2 = jnp.maximum((h2 - m2) / jnp.sqrt(v2 + EPS) * p["g2"] + p["b2"], 0.0)
    return jnp.tanh(h2 @ w3 + p["b3"])[:, :p["action_size"]]


if __name__ == "__main__":
    # Small shapes consistent with the Tennis env this Actor targets.
    batch, state_size, action_size = 8, 24, 2
    fc1_units, fc2_units = 400, 300

    key = jax.random.PRNGKey(0)
    k_state, k_params = jax.random.split(key)
    state = jax.random.normal(k_state, (batch, state_size), dtype=jnp.float32)
    params = init_actor_params(k_params, state_size, action_size, fc1_units, fc2_units)

    out = actor_forward(state, params)
    out = jax.block_until_ready(out)

    ref = actor_reference(state, params)
    assert out.shape == (batch, action_size)
    # bf16 matmul inputs (f32 accumulate) vs pure-f32 reference: loosened tolerance.
    assert jnp.allclose(out, ref, atol=2e-2, rtol=2e-2), "mismatch vs reference"

    print("KERNEL_OK")
</pallas_src>

<mosaic_0001>
module attributes {stable_mosaic.version = 11 : i64} {
  func.func @actor_kernel(%arg0: memref<8x24xf32, #tpu.memory_space<vmem>>, %arg1: memref<24x512xbf16, #tpu.memory_space<vmem>>, %arg2: memref<1x512xf32, #tpu.memory_space<vmem>>, %arg3: memref<1x512xf32, #tpu.memory_space<vmem>>, %arg4: memref<512x384xbf16, #tpu.memory_space<any>>, %arg5: memref<1x384xf32, #tpu.memory_space<vmem>>, %arg6: memref<1x384xf32, #tpu.memory_space<vmem>>, %arg7: memref<384x128xbf16, #tpu.memory_space<any>>, %arg8: memref<1x128xf32, #tpu.memory_space<vmem>>, %arg9: memref<8x128xf32, #tpu.memory_space<vmem>>, %arg10: memref<512x384xbf16, #tpu.memory_space<vmem>>, %arg11: memref<384x128xbf16, #tpu.memory_space<vmem>>, %arg12: memref<2x!tpu.dma_semaphore, #tpu.memory_space<semaphore_mem>>) attributes {dimension_semantics = [], scalar_prefetch = 0 : i64, scratch_operands = 3 : i64, tpu.core_type = #tpu.core_type<tc>} {
    %c0_i32 = arith.constant 0 : i32
    %0 = tpu.memref_slice %arg12[%c0_i32] : memref<2x!tpu.dma_semaphore, #tpu.memory_space<semaphore_mem>> -> memref<1x!tpu.dma_semaphore, #tpu.memory_space<semaphore_mem>>
    %1 = tpu.memref_squeeze %0 : memref<1x!tpu.dma_semaphore, #tpu.memory_space<semaphore_mem>> -> memref<!tpu.dma_semaphore, #tpu.memory_space<semaphore_mem>>
    tpu.enqueue_dma source(%arg4 : memref<512x384xbf16, #tpu.memory_space<any>>) target(%arg10 : memref<512x384xbf16, #tpu.memory_space<vmem>>) target_semaphore(%1 : memref<!tpu.dma_semaphore, #tpu.memory_space<semaphore_mem>>)
    %c1_i32 = arith.constant 1 : i32
    %2 = tpu.memref_slice %arg12[%c1_i32] : memref<2x!tpu.dma_semaphore, #tpu.memory_space<semaphore_mem>> -> memref<1x!tpu.dma_semaphore, #tpu.memory_space<semaphore_mem>>
    %3 = tpu.memref_squeeze %2 : memref<1x!tpu.dma_semaphore, #tpu.memory_space<semaphore_mem>> -> memref<!tpu.dma_semaphore, #tpu.memory_space<semaphore_mem>>
    tpu.enqueue_dma source(%arg7 : memref<384x128xbf16, #tpu.memory_space<any>>) target(%arg11 : memref<384x128xbf16, #tpu.memory_space<vmem>>) target_semaphore(%3 : memref<!tpu.dma_semaphore, #tpu.memory_space<semaphore_mem>>)
    %c0 = arith.constant 0 : index
    %c0_0 = arith.constant 0 : index
    %4 = vector.load %arg0[%c0, %c0_0] : memref<8x24xf32, #tpu.memory_space<vmem>>, vector<8x24xf32>
    %5 = arith.truncf %4 : vector<8x24xf32> to vector<8x24xbf16>
    %c0_1 = arith.constant 0 : index
    %c0_2 = arith.constant 0 : index
    %6 = vector.load %arg1[%c0_1, %c0_2] : memref<24x512xbf16, #tpu.memory_space<vmem>>, vector<24x512xbf16>
    %cst = arith.constant dense<0.000000e+00> : vector<8x512xf32>
    %7 = tpu.matmul %5, %6, %cst {dimension_numbers = #tpu.dot_dimension_numbers<[1], [0], [0], [1], [0, 0, 1, 1], [], []>} : vector<8x24xbf16>, vector<24x512xbf16>, vector<8x512xf32> -> vector<8x512xf32>
    %cst_3 = arith.constant dense<0.000000e+00> : vector<512xf32>
    %8 = vector.multi_reduction <add>, %7, %cst_3 [0] : vector<8x512xf32> to vector<512xf32>
    %9 = vector.shape_cast %8 : vector<512xf32> to vector<1x512xf32>
    %cst_4 = arith.constant 8.000000e+00 : f32
    %10 = vector.broadcast %cst_4 : f32 to vector<1x512xf32>
    %11 = arith.divf %9, %10 : vector<1x512xf32>
    %12 = vector.broadcast %11 : vector<1x512xf32> to vector<8x512xf32>
    %13 = arith.subf %7, %12 : vector<8x512xf32>
    %14 = arith.mulf %13, %13 : vector<8x512xf32>
    %cst_5 = arith.constant dense<0.000000e+00> : vector<512xf32>
    %15 = vector.multi_reduction <add>, %14, %cst_5 [0] : vector<8x512xf32> to vector<512xf32>
    %16 = vector.shape_cast %15 : vector<512xf32> to vector<1x512xf32>
    %cst_6 = arith.constant 8.000000e+00 : f32
    %17 = vector.broadcast %cst_6 : f32 to vector<1x512xf32>
    %18 = arith.divf %16, %17 : vector<1x512xf32>
    %c0_7 = arith.constant 0 : index
    %c0_8 = arith.constant 0 : index
    %19 = vector.load %arg2[%c0_7, %c0_8] : memref<1x512xf32, #tpu.memory_space<vmem>>, vector<1x512xf32>
    %cst_9 = arith.constant 9.99999974E-6 : f32
    %20 = vector.broadcast %cst_9 : f32 to vector<1x512xf32>
    %21 = arith.addf %18, %20 : vector<1x512xf32>
    %22 = math.rsqrt %21 : vector<1x512xf32>
    %23 = arith.mulf %19, %22 : vector<1x512xf32>
    %c0_10 = arith.constant 0 : index
    %c0_11 = arith.constant 0 : index
    %24 = vector.load %arg3[%c0_10, %c0_11] : memref<1x512xf32, #tpu.memory_space<vmem>>, vector<1x512xf32>
    %25 = arith.mulf %11, %23 : vector<1x512xf32>
    %26 = arith.subf %24, %25 : vector<1x512xf32>
    %27 = vector.broadcast %23 : vector<1x512xf32> to vector<8x512xf32>
    %28 = arith.mulf %7, %27 : vector<8x512xf32>
    %29 = vector.broadcast %26 : vector<1x512xf32> to vector<8x512xf32>
    %30 = arith.addf %28, %29 : vector<8x512xf32>
    %cst_12 = arith.constant 0.000000e+00 : f32
    %31 = vector.broadcast %cst_12 : f32 to vector<8x512xf32>
    %32 = arith.maximumf %30, %31 : vector<8x512xf32>
    %c0_i32_13 = arith.constant 0 : i32
    %33 = tpu.memref_slice %arg12[%c0_i32_13] : memref<2x!tpu.dma_semaphore, #tpu.memory_space<semaphore_mem>> -> memref<1x!tpu.dma_semaphore, #tpu.memory_space<semaphore_mem>>
    %34 = tpu.memref_squeeze %33 : memref<1x!tpu.dma_semaphore, #tpu.memory_space<semaphore_mem>> -> memref<!tpu.dma_semaphore, #tpu.memory_space<semaphore_mem>>
    tpu.wait_dma2 semaphore(%34 : memref<!tpu.dma_semaphore, #tpu.memory_space<semaphore_mem>>) src(%arg4 : memref<512x384xbf16, #tpu.memory_space<any>>) dst(%arg10 : memref<512x384xbf16, #tpu.memory_space<vmem>>)
    %35 = arith.truncf %32 : vector<8x512xf32> to vector<8x512xbf16>
    %c0_14 = arith.constant 0 : index
    %c0_15 = arith.constant 0 : index
    %36 = vector.load %arg10[%c0_14, %c0_15] : memref<512x384xbf16, #tpu.memory_space<vmem>>, vector<512x384xbf16>
    %cst_16 = arith.constant dense<0.000000e+00> : vector<8x384xf32>
    %37 = tpu.matmul %35, %36, %cst_16 {dimension_numbers = #tpu.dot_dimension_numbers<[1], [0], [0], [1], [0, 0, 1, 1], [], []>} : vector<8x512xbf16>, vector<512x384xbf16>, vector<8x384xf32> -> vector<8x384xf32>
    %cst_17 = arith.constant dense<0.000000e+00> : vector<384xf32>
    %38 = vector.multi_reduction <add>, %37, %cst_17 [0] : vector<8x384xf32> to vector<384xf32>
    %39 = vector.shape_cast %38 : vector<384xf32> to vector<1x384xf32>
    %cst_18 = arith.constant 8.000000e+00 : f32
    %40 = vector.broadcast %cst_18 : f32 to vector<1x384xf32>
    %41 = arith.divf %39, %40 : vector<1x384xf32>
    %42 = vector.broadcast %41 : vector<1x384xf32> to vector<8x384xf32>
    %43 = arith.subf %37, %42 : vector<8x384xf32>
    %44 = arith.mulf %43, %43 : vector<8x384xf32>
    %cst_19 = arith.constant dense<0.000000e+00> : vector<384xf32>
    %45 = vector.multi_reduction <add>, %44, %cst_19 [0] : vector<8x384xf32> to vector<384xf32>
    %46 = vector.shape_cast %45 : vector<384xf32> to vector<1x384xf32>
    %cst_20 = arith.constant 8.000000e+00 : f32
    %47 = vector.broadcast %cst_20 : f32 to vector<1x384xf32>
    %48 = arith.divf %46, %47 : vector<1x384xf32>
    %c0_21 = arith.constant 0 : index
    %c0_22 = arith.constant 0 : index
    %49 = vector.load %arg5[%c0_21, %c0_22] : memref<1x384xf32, #tpu.memory_space<vmem>>, vector<1x384xf32>
    %cst_23 = arith.constant 9.99999974E-6 : f32
    %50 = vector.broadcast %cst_23 : f32 to vector<1x384xf32>
    %51 = arith.addf %48, %50 : vector<1x384xf32>
    %52 = math.rsqrt %51 : vector<1x384xf32>
    %53 = arith.mulf %49, %52 : vector<1x384xf32>
    %c0_24 = arith.constant 0 : index
    %c0_25 = arith.constant 0 : index
    %54 = vector.load %arg6[%c0_24, %c0_25] : memref<1x384xf32, #tpu.memory_space<vmem>>, vector<1x384xf32>
    %55 = arith.mulf %41, %53 : vector<1x384xf32>
    %56 = arith.subf %54, %55 : vector<1x384xf32>
    %57 = vector.broadcast %53 : vector<1x384xf32> to vector<8x384xf32>
    %58 = arith.mulf %37, %57 : vector<8x384xf32>
    %59 = vector.broadcast %56 : vector<1x384xf32> to vector<8x384xf32>
    %60 = arith.addf %58, %59 : vector<8x384xf32>
    %cst_26 = arith.constant 0.000000e+00 : f32
    %61 = vector.broadcast %cst_26 : f32 to vector<8x384xf32>
    %62 = arith.maximumf %60, %61 : vector<8x384xf32>
    %c1_i32_27 = arith.constant 1 : i32
    %63 = tpu.memref_slice %arg12[%c1_i32_27] : memref<2x!tpu.dma_semaphore, #tpu.memory_space<semaphore_mem>> -> memref<1x!tpu.dma_semaphore, #tpu.memory_space<semaphore_mem>>
    %64 = tpu.memref_squeeze %63 : memref<1x!tpu.dma_semaphore, #tpu.memory_space<semaphore_mem>> -> memref<!tpu.dma_semaphore, #tpu.memory_space<semaphore_mem>>
    tpu.wait_dma2 semaphore(%64 : memref<!tpu.dma_semaphore, #tpu.memory_space<semaphore_mem>>) src(%arg7 : memref<384x128xbf16, #tpu.memory_space<any>>) dst(%arg11 : memref<384x128xbf16, #tpu.memory_space<vmem>>)
    %65 = arith.truncf %62 : vector<8x384xf32> to vector<8x384xbf16>
    %c0_28 = arith.constant 0 : index
    %c0_29 = arith.constant 0 : index
    %66 = vector.load %arg11[%c0_28, %c0_29] : memref<384x128xbf16, #tpu.memory_space<vmem>>, vector<384x128xbf16>
    %cst_30 = arith.constant dense<0.000000e+00> : vector<8x128xf32>
    %67 = tpu.matmul %65, %66, %cst_30 {dimension_numbers = #tpu.dot_dimension_numbers<[1], [0], [0], [1], [0, 0, 1, 1], [], []>} : vector<8x384xbf16>, vector<384x128xbf16>, vector<8x128xf32> -> vector<8x128xf32>
    %c0_31 = arith.constant 0 : index
    %c0_32 = arith.constant 0 : index
    %68 = vector.load %arg8[%c0_31, %c0_32] : memref<1x128xf32, #tpu.memory_space<vmem>>, vector<1x128xf32>
    %69 = vector.broadcast %68 : vector<1x128xf32> to vector<8x128xf32>
    %70 = arith.addf %67, %69 : vector<8x128xf32>
    %71 = math.tanh %70 : vector<8x128xf32>
    %c0_33 = arith.constant 0 : index
    %c0_34 = arith.constant 0 : index
    %72 = vector.load %arg9[%c0_33, %c0_34] : memref<8x128xf32, #tpu.memory_space<vmem>>, vector<8x128xf32>
    tpu.vector_store %arg9[%c0_33, %c0_34], %71 {strides = array<i32>} : memref<8x128xf32, #tpu.memory_space<vmem>>, vector<8x128xf32>,
    return
  }
}

</mosaic_0001>

<bundles_post_ra>
// kernel: tpu_custom_call.1
= control target key start
LH: loop header
LB: loop body
LE: loop exit
PB: predicated region body
PF: predicated region fallthrough
CT: control target
= control target key end

     0   :  { %14 = vsyncpa [#allocation6], 0  ;;  %s1537_s0 = inlined_call_operand.hbm [shape: f32[8,24], index: 0, kind: input, shape index: {}]   ;;  %s1538_s1 = inlined_call_operand.hbm [shape: bf16[24,512], index: 1, kind: input, shape index: {}]   ;;  %s1539_s2 = inlined_call_operand.vmem [shape: f32[1,512], index: 2, kind: input, shape index: {}]   ;;  %s1540_s3 = inlined_call_operand.vmem [shape: f32[1,512], index: 3, kind: input, shape index: {}]   ;;  %s1541_s4 = inlined_call_operand.hbm [shape: bf16[512,384], index: 4, kind: input, shape index: {}]   ;;  %s1542_s5 = inlined_call_operand.vmem [shape: f32[1,384], index: 5, kind: input, shape index: {}]   ;;  %s1543_s6 = inlined_call_operand.vmem [shape: f32[1,384], index: 6, kind: input, shape index: {}]   ;;  %s1544_s7 = inlined_call_operand.hbm [shape: bf16[384,128], index: 7, kind: input, shape index: {}]   ;;  %s1545_s8 = inlined_call_operand.vmem [shape: f32[1,128], index: 8, kind: input, shape index: {}]   ;;  %s1546_s9 = inlined_call_operand.hbm [shape: f32[8,128], index: 9, kind: output, shape index: {}]  }
   0x1   :  { %15 = vsyncpa [#allocation9], 0 }
   0x2   :  { %16 = vsyncpa [#allocation7], 0  ;;  %s1264_s30 = smov [#allocation5]   ;;  %s1265_s11 = smov [#allocation8]  }
   0x3   :  { %s23_s10 = sshll.u32 %s1264_s30, 4  ;;  %s32_s12 = sshll.u32 %s1265_s11, 4  ;;  %s24_s10 = int_to_ptr.vmem [resolvable:$true] %s23_s10  ;;  %s1334_s12 = int_to_ptr.vmem [resolvable:$true] %s32_s12 }
   0x4   :  { %s1166_s15 = scalar_lea.hbm %s1537_s0, 128 }
   0x5   :  { %p1167_p0 = scmp.ne.s32.totalorder %s1537_s0, %s1166_s15  ;;  %p1170_p1 = scmp.lt.u32.totalorder %s1166_s15, %s1537_s0 }
   0x7   :  { %p1172_p2 = pnand %p1170_p1, %p1167_p0 }
   0x9   :  { %1175 = shalt.err (!%p1172_p2)
}
   0xa   :  { %s1176_s20 = scalar_lea.vmem %s24_s10, 128  ;;  %p1181_p4 = scmp.lt.s32.totalorder %s24_s10, %s24_s10 }
   0xb   :  { %p1177_p3 = scmp.ne.s32.totalorder %s24_s10, %s1176_s20  ;;  %p1182_p5 = scmp.lt.s32.totalorder %s1176_s20, %s1176_s20 }
   0xd   :  { %p1183_p6 = por %p1182_p5, %p1181_p4 }
   0xf   :  { %p1184_p7 = pnand %p1183_p6, %p1177_p3 }
  0x11   :  { %1187 = shalt.err (!%p1184_p7)
}
  0x12   :  { %26 = dma.hbm_to_vmem [thread:$0]  %s1537_s0, 128, %s24_s10, [#allocation6]  }
  0x13   :  { %s1188_s25 = scalar_lea.hbm %s1538_s1, 768 }
  0x14   :  { %p1189_p8 = scmp.ne.s32.totalorder %s1538_s1, %s1188_s25  ;;  %p1192_p9 = scmp.lt.u32.totalorder %s1188_s25, %s1538_s1 }
  0x16   :  { %p1194_p10 = pnand %p1192_p9, %p1189_p8 }
  0x18   :  { %1197 = shalt.err (!%p1194_p10)
}
  0x19   :  { %s1198_s30 = scalar_lea.vmem %s1334_s12, 768  ;;  %p1203_p12 = scmp.lt.s32.totalorder %s1334_s12, %s1334_s12 }
  0x1a   :  { %p1199_p11 = scmp.ne.s32.totalorder %s1334_s12, %s1198_s30  ;;  %p1204_p13 = scmp.lt.s32.totalorder %s1198_s30, %s1198_s30 }
  0x1c   :  { %p1205_p0 = por %p1204_p13, %p1203_p12 }
  0x1e   :  { %p1206_p1 = pnand %p1205_p0, %p1199_p11 }
  0x20   :  { %1209 = shalt.err (!%p1206_p1)
}
  0x21   :  { %s1266_s0 = smov 256   ;;  %s1267_s10 = smov 16  }
  0x22   :  { %38 = dma.hbm_to_vmem [thread:$0]  %s1538_s1, 768, %s1334_s12, [#allocation9], %s1266_s0, %s1266_s0, %s1267_s10  }
  0x23   :  { %1254 = dma.done.wait [#allocation6], 128  }
  0x24   :  { %1255 = vsyncadd [#allocation6], 4294967168 }
  0x25   :  { %1256 = dma.done.wait [#allocation9], 768  }
  0x26   :  { %1257 = vsyncadd [#allocation9], 4294966528  ;;  %s60_s14 = sld [smem:[#allocation0]]   ;;  %s1268_s15 = smov 384   ;;  %v1269_v0 = vmov 0   ;;  %vm145_vm0 = vcmask 1043456  }
  0x27   :  { %72 = sst [smem:[#allocation12]] %s1268_s15  ;;  %190 = vmatprep.mubr.bf16.mxu0 %v1269_v0  ;;  %231 = vmatprep.mubr.bf16.mxu1 %v1269_v0  ;;  %s1270_s16 = smov 3   ;;  %vm141_vm1 = vcmask 195584  }
  0x28   :  { %74 = sst [smem:[#allocation12 + $0x1]] %s1268_s15  ;;  %s1271_s17 = smov 64  }
  0x29   :  { %76 = sst [smem:[#allocation12 + $0x2]] %s1270_s16  ;;  %s1272_s18 = smov 128  }
  0x2a   :  { %78 = sst [smem:[#allocation12 + $0x3]] %s1271_s17  ;;  %s1273_s19 = smov 2  }
  0x2b   :  { %80 = sst [smem:[#allocation12 + $0x4]] %s1272_s18  ;;  %s1274_s12 = smov 192  }
  0x2c   :  { %82 = sst [smem:[#allocation12 + $0x5]] %s1273_s19  ;;  %s1004_s1 = sshll.u32 %s60_s14, 26 }
  0x2d   :  { %84 = sst [smem:[#allocation12 + $0x6]] %s1274_s12  ;;  %s1005_s20 = sadd.s32 134217728, %s1004_s1 }
  0x2e   :  { %86 = sst [smem:[#allocation12 + $0x7]] %s1271_s17  ;;  %s1275_s21 = smov 4  }
  0x2f   :  { %88 = sst [smem:[#allocation12 + $0x8]] %s1275_s21  ;;  %s1276_s22 = smov [#allocation2]  }
  0x30   :  { %s68_s23 = sshll.u32 %s1276_s22, 4  ;;  %s1277_s24 = smov [#allocation4]   ;;  %s69_s23 = int_to_ptr.vmem [resolvable:$true] %s68_s23 }
  0x31   :  { %s1278_s25 = smov [#allocation11]   ;;  %s1210_s0 = scalar_lea.hbm %s1544_s7, 3072 }
  0x32   :  { %90 = dma.general %s1541_s4, 12288, %s69_s23, %s1277_s24, %s1278_s25, [#allocation12], %s1005_s20, 0  }
  0x33   :  { %v1140_v1 = vld [vmem:[#allocation8 + $0x4] ss:$16 sps:$4 sm:$0xff]   ;;  %v1142_v2 = vld [vmem:[#allocation8 + $0xc] ss:$16 sps:$4 sm:$0xff]   ;;  %v1144_v3 = vld [vmem:[#allocation8] ss:$16 sps:$4 sm:$0xff]   ;;  %p1211_p2 = scmp.ne.s32.totalorder %s1544_s7, %s1210_s0  ;;  %p1214_p3 = scmp.lt.u32.totalorder %s1210_s0, %s1544_s7 }
  0x34   :  { %158 = vmatprep.subr.bf16.mxu0 %v1140_v1  ;;  %v1145_v4 = vld [vmem:[#allocation8 + $0x8] ss:$16 sps:$4 sm:$0xff]   ;;  %v109_v5 = vld [vmem:[#allocation8 + $0x20] sm:$0xff]  ;;  %199 = vmatprep.subr.bf16.mxu1 %v1142_v2  ;;  %s1279_s4 = smov [#allocation3]  }
  0x35   :  { %v1011_v6 = vcombine.high %v109_v5, %v109_v5  ;;  %v110_v7 = vld [vmem:[#allocation8 + $0x28] sm:$0xff]  ;;  %v1010_v8 = vcombine.low %v109_v5, %v109_v5  ;;  %159 = vmatpush1.bf16.msra.mxu0 %v1144_v3  ;;  %200 = vmatpush1.bf16.msra.mxu1 %v1145_v4  ;;  %v103_v11 = vld [vmem:[#allocation5] sm:$0xff]  ;;  %s99_s28 = sshll.u32 %s1279_s4, 4  ;;  %p1216_p4 = pnand %p1214_p3, %p1211_p2  ;;  %s100_s28 = int_to_ptr.vmem [resolvable:$true] %s99_s28 }
  0x36   :  { %v1013_v9 = vcombine.high %v110_v7, %v110_v7  ;;  %v1012_v10 = vcombine.low %v110_v7, %v110_v7  ;;  %v104_v14 = vpack.c.bf16 %v103_v11, %v103_v11 }
  0x37   :  { %1014 = vmatprep.subr.msk.bf16.mxu0 %vm145_vm0, %v1011_v6  ;;  %v147_v12 = vsel %vm145_vm0, %v1010_v8, 0 }
  0x38   :  { %1016 = vmatprep.subr.msk.bf16.mxu1 %vm145_vm0, %v1013_v9  ;;  %v153_v13 = vsel %vm145_vm0, %v1012_v10, 0 }
  0x39   :  { %161 = vmatpush1.bf16.msra.mxu0 %v147_v12  ;;  %202 = vmatpush1.bf16.msra.mxu1 %v153_v13 }
  0x3c   :  { %1015 = vmatmul.mubr.msk.bf16.vlgmr.msra.gmra.mrb[0].mxu0 %vm141_vm1, %v104_v14  ;;  %1017 = vmatmul.mubr.msk.bf16.vlgmr.msra.gmra.mrb[0].mxu1 %vm141_vm1, %v104_v14 }
  0x3d   :  { %1219 = shalt.err (!%p1216_p4)  }
  0x3e   :  { %s1220_s15 = scalar_lea.vmem %s100_s28, 3072  ;;  %p1225_p6 = scmp.lt.s32.totalorder %s100_s28, %s100_s28 }
  0x3f   :  { %p1221_p5 = scmp.ne.s32.totalorder %s100_s28, %s1220_s15  ;;  %p1226_p7 = scmp.lt.s32.totalorder %s1220_s15, %s1220_s15 }
  0x41   :  { %p1227_p8 = por %p1226_p7, %p1225_p6 }
  0x43   :  { %p1228_p9 = pnand %p1227_p8, %p1221_p5 }
  0x45   :  { %1231 = shalt.err (!%p1228_p9)  }
  0x46   :  { %102 = dma.hbm_to_vmem [thread:$0]  %s1544_s7, 3072, %s100_s28, [#allocation4 + $0x1] }
 0x10f   :  { %v1380_v15 = vpop.f32.mrb[0].mxu0  ;;  %v1382_v16 = vpop.f32.mrb[0].mxu1 }
 0x110   :  { %v240_v17 = vrot.slane %v1380_v15, 4  ;;  %v252_v18 = vrot.slane %v1382_v16, 4  ;;  %v1386_v19 = vpop.f32.mrb[1].mxu0  ;;  %v1388_v20 = vpop.f32.mrb[1].mxu1 }
 0x111   :  { %v246_v21 = vrot.slane %v1386_v19, 4  ;;  %v258_v22 = vrot.slane %v1388_v20, 4  ;;  %v196_v23 = vpop.f32.mrb[2].mxu0  ;;  %v237_v24 = vpop.f32.mrb[2].mxu1 }
 0x112   :  { %v241_v25 = vadd.f32 %v240_v17, %v1380_v15  ;;  %v253_v26 = vadd.f32 %v252_v18, %v1382_v16  ;;  %v197_v27 = vpop.f32.mrb[3].mxu0  ;;  %v238_v28 = vpop.f32.mrb[3].mxu1 }
 0x113   :  { %v247_v29 = vadd.f32 %v246_v21, %v1386_v19  ;;  %v259_v30 = vadd.f32 %v258_v22, %v1388_v20 }
 0x114   :  { %v242_v31 = vrot.slane %v241_v25, 2  ;;  %v254_v32 = vrot.slane %v253_v26, 2 }
 0x115   :  { %v248_v33 = vrot.slane %v247_v29, 2  ;;  %v260_v34 = vrot.slane %v259_v30, 2 }
 0x116   :  { %v243_v35 = vadd.f32 %v242_v31, %v241_v25  ;;  %v255_v36 = vadd.f32 %v254_v32, %v253_v26  ;;  %v1280_v31 = vmov 1966171168  }
 0x117   :  { %v249_v37 = vadd.f32 %v248_v33, %v247_v29  ;;  %v261_v38 = vadd.f32 %v260_v34, %v259_v30  ;;  %v321_v32 = vunpack.c.l.s4 %v1280_v31  ;;  %v323_v33 = vlaneseq }
 0x118   :  { %v244_v39 = vrot.slane %v243_v35, 1  ;;  %v256_v40 = vrot.slane %v255_v36, 1 }
 0x119   :  { %v250_v41 = vrot.slane %v249_v37, 1  ;;  %v262_v42 = vrot.slane %v261_v38, 1  ;;  %v322_v34 = vunpack.c.0.s8 %v321_v32 }
 0x11a   :  { %v245_v43 = vadd.f32 %v244_v39, %v243_v35  ;;  %v257_v44 = vadd.f32 %v256_v40, %v255_v36  ;;  %v324_v35 = vshrl.u32 %v323_v33, 7 }
 0x11b   :  { %v251_v45 = vadd.f32 %v250_v41, %v249_v37  ;;  %v263_v46 = vadd.f32 %v262_v42, %v261_v38 }
 0x11c   :  { %v1396_v47 = vmul.f32 0.125, %v245_v43  ;;  %v1398_v48 = vmul.f32 0.125, %v257_v44  ;;  %v1412_v38 = vsub.s32 %v322_v34, %v324_v35 }
 0x11d   :  { %v1400_v49 = vmul.f32 0.125, %v251_v45  ;;  %v1402_v50 = vmul.f32 0.125, %v263_v46  ;;  %v305_v46 = vld [vmem:[%s1539_s2] sm:$0xf] }
 0x11e   :  { %v269_v51 = vsub.f32 %v1380_v15, %v1396_v47  ;;  %v271_v52 = vsub.f32 %v1382_v16, %v1398_v48 }
 0x11f   :  { %v270_v53 = vsub.f32 %v1386_v19, %v1400_v49  ;;  %v272_v54 = vsub.f32 %v1388_v20, %v1402_v50 }
 0x120   :  { %v273_v55 = vmul.f32 %v269_v51, %v269_v51  ;;  %v275_v56 = vmul.f32 %v271_v52, %v271_v52  ;;  %v1419_v51 = vsub.s32 0, %v324_v35 }
 0x121   :  { %v274_v57 = vmul.f32 %v270_v53, %v270_v53  ;;  %v276_v58 = vmul.f32 %v272_v54, %v272_v54  ;;  %v1422_v53 = vsub.s32 1, %v324_v35  ;;  %v1424_v54 = vsub.s32 2, %v324_v35 }
 0x122   :  { %v277_v59 = vrot.slane %v273_v55, 4  ;;  %v289_v60 = vrot.slane %v275_v56, 4 }
 0x123   :  { %v283_v61 = vrot.slane %v274_v57, 4  ;;  %v295_v62 = vrot.slane %v276_v58, 4 }
 0x124   :  { %v278_v63 = vadd.f32 %v277_v59, %v273_v55  ;;  %v290_v0 = vadd.f32 %v289_v60, %v275_v56  ;;  %v360_v55 = vsub.s32 3, %v324_v35 }
 0x125   :  { %v284_v1 = vadd.f32 %v283_v61, %v274_v57  ;;  %v296_v2 = vadd.f32 %v295_v62, %v276_v58 }
 0x126   :  { %v279_v3 = vrot.slane %v278_v63, 2  ;;  %v291_v4 = vrot.slane %v290_v0, 2 }
 0x127   :  { %v285_v5 = vrot.slane %v284_v1, 2  ;;  %v297_v6 = vrot.slane %v296_v2, 2 }
 0x128   :  { %v280_v7 = vadd.f32 %v279_v3, %v278_v63  ;;  %v292_v8 = vadd.f32 %v291_v4, %v290_v0 }
 0x129   :  { %v286_v9 = vadd.f32 %v285_v5, %v284_v1  ;;  %v298_v10 = vadd.f32 %v297_v6, %v296_v2 }
 0x12a   :  { %v281_v11 = vrot.slane %v280_v7, 1  ;;  %v293_v12 = vrot.slane %v292_v8, 1 }
 0x12b   :  { %v287_v13 = vrot.slane %v286_v9, 1  ;;  %v299_v14 = vrot.slane %v298_v10, 1 }
 0x12c   :  { %v282_v17 = vadd.f32 %v281_v11, %v280_v7  ;;  %v294_v18 = vadd.f32 %v293_v12, %v292_v8 }
 0x12d   :  { %v288_v21 = vadd.f32 %v287_v13, %v286_v9  ;;  %v300_v22 = vadd.f32 %v299_v14, %v298_v10 }
 0x12e   :  { %v301_v23 = vmul.f32 0.125, %v282_v17  ;;  %v303_v24 = vmul.f32 0.125, %v294_v18 }
 0x12f   :  { %v302_v25 = vmul.f32 0.125, %v288_v21  ;;  %v304_v26 = vmul.f32 0.125, %v300_v22 }
 0x130   :  { %v306_v27 = vadd.f32 1e-05, %v301_v23  ;;  %v308_v28 = vadd.f32 1e-05, %v303_v24 }
 0x131   :  { %v307_v29 = vadd.f32 1e-05, %v302_v25  ;;  %v309_v30 = vadd.f32 1e-05, %v304_v26 }
 0x132   :  { %1150 = vrsqrt.f32 %v306_v27 }
 0x133   :  { %1152 = vrsqrt.f32 %v308_v28 }
 0x134   :  { %1154 = vrsqrt.f32 %v307_v29 }
 0x135   :  { %1156 = vrsqrt.f32 %v309_v30 }
 0x13c   :  { %v1151_v36 = vpop.eup %1150 }
 0x13d   :  { %v1153_v37 = vpop.eup %1152 }
 0x13e   :  { %v1155_v39 = vpop.eup %1154 }
 0x13f   :  { %v1157_v40 = vpop.eup %1156  ;;  %v318_v41 = vcombine.low %v1151_v36, %v1155_v39 }
 0x140   :  { %v319_v42 = vcombine.low %v1153_v37, %v1157_v40 }
 0x141   :  { %v326_v43 = vrot.slane %v318_v41, %v1412_v38 }
 0x142   :  { %v333_v44 = vrot.slane %v319_v42, %v1412_v38 }
 0x144   :  { %v334_v45 = vcombine.low %v326_v43, %v333_v44 }
 0x146   :  { %v341_v52 = vrot.slane %v334_v45, %v1412_v38 }
 0x148   :  { %v343_v56 = vmul.f32 %v341_v52, %v305_v46 }
 0x14a   :  { %v349_v57 = vrot.slane %v343_v56, %v1419_v51  ;;  %v353_v58 = vrot.slane %v343_v56, %v1422_v53  ;;  %v357_v59 = vrot.slane %v343_v56, %v1424_v54  ;;  %v361_v60 = vrot.slane %v343_v56, %v360_v55 }
 0x14c   :  { %v366_v61 = vmul.f32 %v349_v57, %v1396_v47  ;;  %v367_v62 = vmul.f32 %v353_v58, %v1400_v49  ;;  %v368_v63 = vmul.f32 %v357_v59, %v1398_v48  ;;  %v369_v0 = vmul.f32 %v361_v60, %v1402_v50  ;;  %v344_v48 = vld [vmem:[%s1540_s3] sm:$0xf] }
 0x14d   :  { %v400_v1 = vmul.f32 %v349_v57, %v1380_v15  ;;  %v401_v2 = vmul.f32 %v353_v58, %v1386_v19  ;;  %v402_v3 = vmul.f32 %v357_v59, %v1382_v16  ;;  %v403_v4 = vmul.f32 %v361_v60, %v1388_v20 }
 0x14e   :  { %v374_v5 = vcombine.low %v366_v61, %v367_v62  ;;  %v375_v6 = vcombine.low %v368_v63, %v369_v0 }
 0x150   :  { %v382_v7 = vrot.slane %v374_v5, %v1412_v38  ;;  %v389_v47 = vrot.slane %v375_v6, %v1412_v38 }
 0x152   :  { %v390_v8 = vcombine.low %v382_v7, %v389_v47 }
 0x154   :  { %v397_v49 = vrot.slane %v390_v8, %v1412_v38 }
 0x156   :  { %v399_v15 = vsub.f32 %v344_v48, %v397_v49 }
 0x158   :  { %v408_v19 = vrot.slane %v399_v15, %v1419_v51  ;;  %v412_v16 = vrot.slane %v399_v15, %v1422_v53  ;;  %v416_v20 = vrot.slane %v399_v15, %v1424_v54  ;;  %v420_v50 = vrot.slane %v399_v15, %v360_v55 }
 0x15a   :  { %v1446_v9 = vadd.f32 %v408_v19, %v400_v1  ;;  %v426_v10 = vadd.f32 %v412_v16, %v401_v2  ;;  %v1448_v11 = vadd.f32 %v416_v20, %v402_v3  ;;  %v1450_v12 = vadd.f32 %v420_v50, %v403_v4 }
 0x15c   :  { %v429_v13 = vmax.f32 %v1446_v9, 0.0  ;;  %v430_v14 = vmax.f32 %v426_v10, 0.0  ;;  %v431_v17 = vmax.f32 %v1448_v11, 0.0  ;;  %v432_v18 = vmax.f32 %v1450_v12, 0.0 }
 0x15d   :  { %1258 = dma.done.wait [#allocation4], 12288 }
 0x15e   :  { %1259 = vsyncadd [#allocation4], 4294955008  ;;  %v438_v21 = vpack.c.bf16 %v430_v14, %v430_v14  ;;  %v442_v22 = vld [vmem:[#allocation2 + $0x8] sm:$0xff]  ;;  %v441_v23 = vld [vmem:[#allocation2] sm:$0xff]  ;;  %v1458_v1 = vpack.c.bf16 %v429_v13, %v429_v13  ;;  %v1463_v3 = vpack.c.bf16 %v432_v18, %v432_v18 }
 0x15f   :  { %v445_v24 = vld [vmem:[#allocation2 + $0x20] sm:$0xff]  ;;  %537 = vmatprep.subr.bf16.mxu0 %v442_v22  ;;  %v467_v25 = vld [vmem:[#allocation2 + $0xd0] sm:$0xff]  ;;  %v444_v27 = vld [vmem:[#allocation2 + $0x18] sm:$0xff] }
 0x160   :  { %651 = vmatprep.mubr.bf16.mxu1 %v438_v21  ;;  %569 = vmatprep.mubr.bf16.mxu0 %v438_v21  ;;  %v443_v26 = vld [vmem:[#allocation2 + $0x10] sm:$0xff]  ;;  %v470_v28 = vld [vmem:[#allocation2 + $0xe8] sm:$0xff]  ;;  %v448_v29 = vld [vmem:[#allocation2 + $0x38] sm:$0xff] }
 0x161   :  { %538 = vmatpush1.bf16.msra.mxu0 %v441_v23  ;;  %1021 = vmatprep.subr.bf16.mxu1 %v467_v25  ;;  %v446_v30 = vld [vmem:[#allocation2 + $0x28] sm:$0xff]  ;;  %v473_v31 = vld [vmem:[#allocation2 + $0x100] sm:$0xff]  ;;  %v447_v32 = vld [vmem:[#allocation2 + $0x30] sm:$0xff] }
 0x162   :  { %539 = vmatprep.subr.bf16.mxu0 %v445_v24  ;;  %1022 = vmatpush3.bf16.msra.mxu1 %v443_v26  ;;  %v451_v33 = vld [vmem:[#allocation2 + $0x50] sm:$0xff]  ;;  %v449_v34 = vld [vmem:[#allocation2 + $0x40] sm:$0xff]  ;;  %v476_v35 = vld [vmem:[#allocation2 + $0x118] sm:$0xff] }
 0x163   :  { %1023 = vmatprep.subr.bf16.mxu1 %v470_v28  ;;  %v450_v36 = vld [vmem:[#allocation2 + $0x48] sm:$0xff]  ;;  %v452_v39 = vld [vmem:[#allocation2 + $0x58] sm:$0xff]  ;;  %v479_v40 = vld [vmem:[#allocation2 + $0x130] sm:$0xff] }
 0x164   :  { %v454_v37 = vld [vmem:[#allocation2 + $0x68] sm:$0xff]  ;;  %v453_v41 = vld [vmem:[#allocation2 + $0x60] sm:$0xff]  ;;  %v455_v43 = vld [vmem:[#allocation2 + $0x70] sm:$0xff] }
 0x165   :  { %540 = vmatpush1.bf16.msra.mxu0 %v444_v27  ;;  %v457_v42 = vld [vmem:[#allocation2 + $0x80] sm:$0xff]  ;;  %v482_v44 = vld [vmem:[#allocation2 + $0x148] sm:$0xff]  ;;  %v456_v45 = vld [vmem:[#allocation2 + $0x78] sm:$0xff] }
 0x166   :  { %541 = vmatprep.subr.bf16.mxu0 %v448_v29  ;;  %1024 = vmatpush3.bf16.msra.mxu1 %v446_v30  ;;  %v460_v46 = vld [vmem:[#allocation2 + $0x98] sm:$0xff]  ;;  %v458_v52 = vld [vmem:[#allocation2 + $0x88] sm:$0xff]  ;;  %v485_v55 = vld [vmem:[#allocation2 + $0x160] sm:$0xff] }
 0x167   :  { %1025 = vmatprep.subr.bf16.mxu1 %v473_v31  ;;  %v459_v56 = vld [vmem:[#allocation2 + $0x90] sm:$0xff]  ;;  %v461_v58 = vld [vmem:[#allocation2 + $0xa0] sm:$0xff]  ;;  %v488_v59 = vld [vmem:[#allocation2 + $0x178] sm:$0xff] }
 0x168   :  { %v463_v57 = vld [vmem:[#allocation2 + $0xb0] sm:$0xff]  ;;  %v462_v60 = vld [vmem:[#allocation2 + $0xa8] sm:$0xff]  ;;  %v464_v62 = vld [vmem:[#allocation2 + $0xb8] sm:$0xff] }
 0x169   :  { %542 = vmatpush1.bf16.msra.mxu0 %v447_v32  ;;  %v466_v61 = vld [vmem:[#allocation2 + $0xc8] sm:$0xff]  ;;  %v515_v63 = vld [vmem:[#allocation2 + $0x250] sm:$0xff]  ;;  %v465_v0 = vld [vmem:[#allocation2 + $0xc0] sm:$0xff]  ;;  %v1470_v32 = vpack.c.bf16 %v431_v17, %v431_v17 }
 0x16a   :  { %543 = vmatprep.subr.bf16.mxu0 %v451_v33  ;;  %1026 = vmatpush3.bf16.msra.mxu1 %v449_v34  ;;  %v469_v2 = vld [vmem:[#allocation2 + $0xe0] sm:$0xff]  ;;  %v491_v4 = vld [vmem:[#allocation2 + $0x190] sm:$0xff]  ;;  %v518_v5 = vld [vmem:[#allocation2 + $0x268] sm:$0xff] }
 0x16b   :  { %1027 = vmatprep.subr.bf16.mxu1 %v476_v35  ;;  %v468_v6 = vld [vmem:[#allocation2 + $0xd8] sm:$0xff]  ;;  %v494_v47 = vld [vmem:[#allocation2 + $0x1a8] sm:$0xff]  ;;  %v521_v8 = vld [vmem:[#allocation2 + $0x280] sm:$0xff] }
 0x16c   :  { %v472_v7 = vld [vmem:[#allocation2 + $0xf8] sm:$0xff]  ;;  %v471_v48 = vld [vmem:[#allocation2 + $0xf0] sm:$0xff]  ;;  %v497_v15 = vld [vmem:[#allocation2 + $0x1c0] sm:$0xff] }
 0x16d   :  { %544 = vmatpush1.bf16.msra.mxu0 %v450_v36  ;;  %v475_v49 = vld [vmem:[#allocation2 + $0x110] sm:$0xff]  ;;  %v524_v19 = vld [vmem:[#allocation2 + $0x298] sm:$0xff]  ;;  %v474_v16 = vld [vmem:[#allocation2 + $0x108] sm:$0xff] }
 0x16e   :  { %545 = vmatprep.subr.bf16.mxu0 %v454_v37  ;;  %1028 = vmatpush3.bf16.msra.mxu1 %v452_v39  ;;  %v478_v20 = vld [vmem:[#allocation2 + $0x128] sm:$0xff]  ;;  %v500_v50 = vld [vmem:[#allocation2 + $0x1d8] sm:$0xff]  ;;  %v527_v9 = vld [vmem:[#allocation2 + $0x2b0] sm:$0xff] }
 0x16f   :  { %1029 = vmatprep.subr.bf16.mxu1 %v479_v40  ;;  %v477_v10 = vld [vmem:[#allocation2 + $0x120] sm:$0xff]  ;;  %v503_v13 = vld [vmem:[#allocation2 + $0x1f0] sm:$0xff]  ;;  %v530_v14 = vld [vmem:[#allocation2 + $0x2c8] sm:$0xff] }
 0x170   :  { %v481_v12 = vld [vmem:[#allocation2 + $0x140] sm:$0xff]  ;;  %v480_v18 = vld [vmem:[#allocation2 + $0x138] sm:$0xff]  ;;  %v506_v22 = vld [vmem:[#allocation2 + $0x208] sm:$0xff] }
 0x171   :  { %546 = vmatpush1.bf16.msra.mxu0 %v453_v41  ;;  %v484_v21 = vld [vmem:[#allocation2 + $0x158] sm:$0xff]  ;;  %v533_v23 = vld [vmem:[#allocation2 + $0x2e0] sm:$0xff]  ;;  %v483_v24 = vld [vmem:[#allocation2 + $0x150] sm:$0xff] }
 0x172   :  { %547 = vmatprep.subr.bf16.mxu0 %v457_v42  ;;  %1030 = vmatpush3.bf16.msra.mxu1 %v455_v43  ;;  %v487_v25 = vld [vmem:[#allocation2 + $0x170] sm:$0xff]  ;;  %v509_v26 = vld [vmem:[#allocation2 + $0x220] sm:$0xff]  ;;  %v536_v27 = vld [vmem:[#allocation2 + $0x2f8] sm:$0xff] }
 0x173   :  { %1031 = vmatprep.subr.bf16.mxu1 %v482_v44  ;;  %v486_v28 = vld [vmem:[#allocation2 + $0x168] sm:$0xff]  ;;  %v512_v30 = vld [vmem:[#allocation2 + $0x238] sm:$0xff]  ;;  %v489_v31 = vld [vmem:[#allocation2 + $0x180] sm:$0xff] }
 0x174   :  { %v490_v29 = vld [vmem:[#allocation2 + $0x188] sm:$0xff]  ;;  %v493_v33 = vld [vmem:[#allocation2 + $0x1a0] sm:$0xff]  ;;  %v492_v34 = vld [vmem:[#allocation2 + $0x198] sm:$0xff] }
 0x175   :  { %548 = vmatpush1.bf16.msra.mxu0 %v456_v45  ;;  %v496_v35 = vld [vmem:[#allocation2 + $0x1b8] sm:$0xff]  ;;  %v495_v36 = vld [vmem:[#allocation2 + $0x1b0] sm:$0xff]  ;;  %v498_v11 = vld [vmem:[#allocation2 + $0x1c8] sm:$0xff] }
 0x176   :  { %549 = vmatprep.subr.bf16.mxu0 %v460_v46  ;;  %1032 = vmatpush3.bf16.msra.mxu1 %v458_v52  ;;  %v499_v37 = vld [vmem:[#allocation2 + $0x1d0] sm:$0xff]  ;;  %v502_v17 = vld [vmem:[#allocation2 + $0x1e8] sm:$0xff]  ;;  %v501_v39 = vld [vmem:[#allocation2 + $0x1e0] sm:$0xff] }
 0x177   :  { %1033 = vmatprep.subr.bf16.mxu1 %v485_v55  ;;  %v505_v40 = vld [vmem:[#allocation2 + $0x200] sm:$0xff]  ;;  %v504_v41 = vld [vmem:[#allocation2 + $0x1f8] sm:$0xff]  ;;  %v507_v43 = vld [vmem:[#allocation2 + $0x210] sm:$0xff] }
 0x178   :  { %v508_v42 = vld [vmem:[#allocation2 + $0x218] sm:$0xff]  ;;  %v511_v44 = vld [vmem:[#allocation2 + $0x230] sm:$0xff]  ;;  %v510_v45 = vld [vmem:[#allocation2 + $0x228] sm:$0xff] }
 0x179   :  { %550 = vmatpush1.bf16.msra.mxu0 %v459_v56  ;;  %v514_v46 = vld [vmem:[#allocation2 + $0x248] sm:$0xff]  ;;  %v513_v52 = vld [vmem:[#allocation2 + $0x240] sm:$0xff]  ;;  %v516_v56 = vld [vmem:[#allocation2 + $0x258] sm:$0xff] }
 0x17a   :  { %551 = vmatprep.subr.bf16.mxu0 %v463_v57  ;;  %1034 = vmatpush3.bf16.msra.mxu1 %v461_v58  ;;  %v517_v55 = vld [vmem:[#allocation2 + $0x260] sm:$0xff]  ;;  %v520_v57 = vld [vmem:[#allocation2 + $0x278] sm:$0xff]  ;;  %v519_v58 = vld [vmem:[#allocation2 + $0x270] sm:$0xff] }
 0x17b   :  { %1035 = vmatprep.subr.bf16.mxu1 %v488_v59  ;;  %v523_v59 = vld [vmem:[#allocation2 + $0x290] sm:$0xff] }
 0x17d   :  { %552 = vmatpush1.bf16.msra.mxu0 %v462_v60  ;;  %v522_v60 = vld [vmem:[#allocation2 + $0x288] sm:$0xff] }
 0x17e   :  { %553 = vmatprep.subr.bf16.mxu0 %v466_v61  ;;  %1036 = vmatpush3.bf16.msra.mxu1 %v464_v62  ;;  %v526_v61 = vld [vmem:[#allocation2 + $0x2a8] sm:$0xff]  ;;  %v525_v62 = vld [vmem:[#allocation2 + $0x2a0] sm:$0xff] }
 0x17f   :  { %1043 = vmatprep.subr.bf16.mxu1 %v515_v63  ;;  %v529_v63 = vld [vmem:[#allocation2 + $0x2c0] sm:$0xff] }
 0x181   :  { %554 = vmatpush1.bf16.msra.mxu0 %v465_v0  ;;  %652 = vmatmul.mubr.bf16.vlgmr.msra.gmra.mrb[4].mxu1 %v1458_v1  ;;  %v528_v0 = vld [vmem:[#allocation2 + $0x2b8] sm:$0xff] }
 0x182   :  { %555 = vmatprep.subr.bf16.mxu0 %v469_v2  ;;  %1044 = vmatpush3.bf16.msra.mxu1 %v491_v4  ;;  %v531_v2 = vld [vmem:[#allocation2 + $0x2d0] sm:$0xff]  ;;  %v534_v4 = vld [vmem:[#allocation2 + $0x2e8] sm:$0xff] }
 0x183   :  { %691 = vmatprep.mubr.bf16.mxu1 %v1463_v3  ;;  %1045 = vmatprep.subr.bf16.mxu1 %v518_v5 }
 0x185   :  { %556 = vmatpush1.bf16.msra.mxu0 %v468_v6 }
 0x186   :  { %557 = vmatprep.subr.bf16.mxu0 %v472_v7  ;;  %1046 = vmatpush3.bf16.msra.mxu1 %v494_v47 }
 0x187   :  { %1047 = vmatprep.subr.bf16.mxu1 %v521_v8 }
 0x189   :  { %558 = vmatpush1.bf16.msra.mxu0 %v471_v48 }
 0x18a   :  { %559 = vmatprep.subr.bf16.mxu0 %v475_v49  ;;  %1048 = vmatpush3.bf16.msra.mxu1 %v497_v15 }
 0x18b   :  { %1049 = vmatprep.subr.bf16.mxu1 %v524_v19 }
 0x18d   :  { %560 = vmatpush1.bf16.msra.mxu0 %v474_v16 }
 0x18e   :  { %561 = vmatprep.subr.bf16.mxu0 %v478_v20  ;;  %1050 = vmatpush3.bf16.msra.mxu1 %v500_v50 }
 0x18f   :  { %1051 = vmatprep.subr.bf16.mxu1 %v527_v9 }
 0x191   :  { %562 = vmatpush1.bf16.msra.mxu0 %v477_v10 }
 0x192   :  { %563 = vmatprep.subr.bf16.mxu0 %v481_v12  ;;  %1052 = vmatpush3.bf16.msra.mxu1 %v503_v13 }
 0x193   :  { %1053 = vmatprep.subr.bf16.mxu1 %v530_v14 }
 0x195   :  { %564 = vmatpush1.bf16.msra.mxu0 %v480_v18 }
 0x196   :  { %565 = vmatprep.subr.bf16.mxu0 %v484_v21  ;;  %1054 = vmatpush3.bf16.msra.mxu1 %v506_v22 }
 0x197   :  { %1055 = vmatprep.subr.bf16.mxu1 %v533_v23 }
 0x199   :  { %566 = vmatpush1.bf16.msra.mxu0 %v483_v24 }
 0x19a   :  { %567 = vmatprep.subr.bf16.mxu0 %v487_v25  ;;  %1056 = vmatpush3.bf16.msra.mxu1 %v509_v26 }
 0x19b   :  { %1057 = vmatprep.subr.bf16.mxu1 %v536_v27 }
 0x19d   :  { %568 = vmatpush1.bf16.msra.mxu0 %v486_v28 }
 0x19e   :  { %578 = vmatprep.subr.bf16.mxu0 %v490_v29  ;;  %1058 = vmatpush3.bf16.msra.mxu1 %v512_v30 }
 0x1a0   :  { %570 = vmatmul.mubr.bf16.vlgmr.msra.gmra.mrb[4].mxu0 %v1458_v1  ;;  %v532_v1 = vld [vmem:[#allocation2 + $0x2d8] sm:$0xff] }
 0x1a1   :  { %579 = vmatpush1.bf16.msra.mxu0 %v489_v31  ;;  %610 = vmatprep.mubr.bf16.mxu0 %v1463_v3  ;;  %v535_v3 = vld [vmem:[#allocation2 + $0x2f0] sm:$0xff] }
 0x1a2   :  { %580 = vmatprep.subr.bf16.mxu0 %v493_v33  ;;  %692 = vmatmul.mubr.bf16.vlgmr.msra.gmra.mrb[8].mxu1 %v1470_v32 }
 0x1a5   :  { %581 = vmatpush1.bf16.msra.mxu0 %v492_v34 }
 0x1a6   :  { %582 = vmatprep.subr.bf16.mxu0 %v496_v35 }
 0x1a9   :  { %583 = vmatpush1.bf16.msra.mxu0 %v495_v36 }
 0x1aa   :  { %584 = vmatprep.subr.bf16.mxu0 %v499_v37 }
 0x1ad   :  { %585 = vmatpush1.bf16.msra.mxu0 %v498_v11 }
 0x1ae   :  { %586 = vmatprep.subr.bf16.mxu0 %v502_v17 }
 0x1b1   :  { %587 = vmatpush1.bf16.msra.mxu0 %v501_v39 }
 0x1b2   :  { %588 = vmatprep.subr.bf16.mxu0 %v505_v40 }
 0x1b5   :  { %589 = vmatpush1.bf16.msra.mxu0 %v504_v41 }
 0x1b6   :  { %590 = vmatprep.subr.bf16.mxu0 %v508_v42 }
 0x1b9   :  { %591 = vmatpush1.bf16.msra.mxu0 %v507_v43 }
 0x1ba   :  { %592 = vmatprep.subr.bf16.mxu0 %v511_v44 }
 0x1bd   :  { %593 = vmatpush1.bf16.msra.mxu0 %v510_v45 }
 0x1be   :  { %594 = vmatprep.subr.bf16.mxu0 %v514_v46 }
 0x1c1   :  { %595 = vmatpush1.bf16.msra.mxu0 %v513_v52 }
 0x1c2   :  { %596 = vmatprep.subr.bf16.mxu0 %v517_v55 }
 0x1c5   :  { %597 = vmatpush1.bf16.msra.mxu0 %v516_v56 }
 0x1c6   :  { %598 = vmatprep.subr.bf16.mxu0 %v520_v57 }
 0x1c9   :  { %599 = vmatpush1.bf16.msra.mxu0 %v519_v58 }
 0x1ca   :  { %600 = vmatprep.subr.bf16.mxu0 %v523_v59 }
 0x1cd   :  { %601 = vmatpush1.bf16.msra.mxu0 %v522_v60 }
 0x1ce   :  { %602 = vmatprep.subr.bf16.mxu0 %v526_v61 }
 0x1d1   :  { %603 = vmatpush1.bf16.msra.mxu0 %v525_v62 }
 0x1d2   :  { %604 = vmatprep.subr.bf16.mxu0 %v529_v63 }
 0x1d5   :  { %605 = vmatpush1.bf16.msra.mxu0 %v528_v0 }
 0x1d6   :  { %606 = vmatprep.subr.bf16.mxu0 %v532_v1 }
 0x1d9   :  { %607 = vmatpush1.bf16.msra.mxu0 %v531_v2 }
 0x1da   :  { %608 = vmatprep.subr.bf16.mxu0 %v535_v3 }
 0x1dd   :  { %609 = vmatpush1.bf16.msra.mxu0 %v534_v4 }
 0x1e0   :  { %611 = vmatmul.mubr.bf16.vlgmr.msra.gmra.mrb[4].mxu0 %v1470_v32 }
 0x254   :  { %v1037_v5 = vpop.f32.mrb[4].mxu1 }
 0x255   :  { %v1038_v6 = vpop.f32.mrb[5].mxu1 }
 0x256   :  { %v1039_v7 = vadd.f32 %v1038_v6, %v1037_v5  ;;  %v1040_v47 = vpop.f32.mrb[6].mxu1 }
 0x257   :  { %v1041_v8 = vpop.f32.mrb[7].mxu1 }
 0x275   :  { %v1059_v48 = vpop.f32.mrb[8].mxu1 }
 0x276   :  { %v1060_v49 = vpop.f32.mrb[9].mxu1 }
 0x277   :  { %v1061_v15 = vadd.f32 %v1060_v49, %v1059_v48  ;;  %v1062_v19 = vpop.f32.mrb[10].mxu1 }
 0x278   :  { %v1063_v16 = vpop.f32.mrb[11].mxu1 }
 0x279   :  { %v1476_v20 = vadd.f32 %v1061_v15, %v1039_v7 }
 0x27b   :  { %v711_v50 = vrot.slane %v1476_v20, 4 }
 0x27d   :  { %v712_v9 = vadd.f32 %v711_v50, %v1476_v20 }
 0x27f   :  { %v713_v10 = vrot.slane %v712_v9, 2 }
 0x281   :  { %v714_v12 = vadd.f32 %v713_v10, %v712_v9 }
 0x283   :  { %v715_v13 = vrot.slane %v714_v12, 1 }
 0x285   :  { %v716_v14 = vadd.f32 %v715_v13, %v714_v12  ;;  %v747_v12 = vld [vmem:[%s1542_s5] sm:$0x7] }
 0x287   :  { %v1480_v18 = vmul.f32 0.125, %v716_v14 }
 0x289   :  { %v722_v21 = vsub.f32 %v1476_v20, %v1480_v18 }
 0x28b   :  { %v725_v22 = vmul.f32 %v722_v21, %v722_v21 }
 0x28d   :  { %v738_v26 = vrot.slane %v725_v22, 4 }
 0x28f   :  { %v739_v33 = vadd.f32 %v738_v26, %v725_v22 }
 0x291   :  { %v740_v11 = vrot.slane %v739_v33, 2 }
 0x293   :  { %v741_v42 = vadd.f32 %v740_v11, %v739_v33 }
 0x295   :  { %v742_v52 = vrot.slane %v741_v42, 1 }
 0x297   :  { %v743_v59 = vadd.f32 %v742_v52, %v741_v42 }
 0x299   :  { %v746_v0 = vmul.f32 0.125, %v743_v59 }
 0x29b   :  { %v750_v5 = vadd.f32 1e-05, %v746_v0 }
 0x29d   :  { %1158 = vrsqrt.f32 %v750_v5 }
 0x2a7   :  { %v1159_v49 = vpop.eup %1158 }
 0x2a8   :  { %v771_v9 = vrot.slane %v1159_v49, %v1412_v38 }
 0x2b3   :  { %v1484_v23 = vpop.f32.mrb[4].mxu0 }
 0x2b4   :  { %v699_v24 = vrot.slane %v1484_v23, 4  ;;  %v1487_v25 = vpop.f32.mrb[5].mxu0 }
 0x2b5   :  { %v705_v27 = vrot.slane %v1487_v25, 4  ;;  %v616_v28 = vpop.f32.mrb[6].mxu0 }
 0x2b6   :  { %v700_v29 = vadd.f32 %v699_v24, %v1484_v23  ;;  %v617_v30 = vpop.f32.mrb[7].mxu0 }
 0x2b7   :  { %v706_v31 = vadd.f32 %v705_v27, %v1487_v25 }
 0x2b8   :  { %v701_v32 = vrot.slane %v700_v29, 2 }
 0x2b9   :  { %v707_v34 = vrot.slane %v706_v31, 2 }
 0x2ba   :  { %v702_v35 = vadd.f32 %v701_v32, %v700_v29 }
 0x2bb   :  { %v708_v36 = vadd.f32 %v707_v34, %v706_v31 }
 0x2bc   :  { %v703_v37 = vrot.slane %v702_v35, 1 }
 0x2bd   :  { %v709_v17 = vrot.slane %v708_v36, 1 }
 0x2be   :  { %v704_v39 = vadd.f32 %v703_v37, %v702_v35  ;;  %v782_v35 = vld [vmem:[%s1543_s6] sm:$0x7] }
 0x2bf   :  { %v710_v40 = vadd.f32 %v709_v17, %v708_v36 }
 0x2c0   :  { %v717_v41 = vmul.f32 0.125, %v704_v39 }
 0x2c1   :  { %v718_v43 = vmul.f32 0.125, %v710_v40 }
 0x2c2   :  { %v720_v44 = vsub.f32 %v1484_v23, %v717_v41 }
 0x2c3   :  { %v721_v45 = vsub.f32 %v1487_v25, %v718_v43 }
 0x2c4   :  { %v723_v46 = vmul.f32 %v720_v44, %v720_v44 }
 0x2c5   :  { %v724_v55 = vmul.f32 %v721_v45, %v721_v45 }
 0x2c6   :  { %v726_v56 = vrot.slane %v723_v46, 4 }
 0x2c7   :  { %v732_v57 = vrot.slane %v724_v55, 4 }
 0x2c8   :  { %v727_v58 = vadd.f32 %v726_v56, %v723_v46 }
 0x2c9   :  { %v733_v60 = vadd.f32 %v732_v57, %v724_v55 }
 0x2ca   :  { %v728_v61 = vrot.slane %v727_v58, 2 }
 0x2cb   :  { %v734_v62 = vrot.slane %v733_v60, 2 }
 0x2cc   :  { %v729_v63 = vadd.f32 %v728_v61, %v727_v58 }
 0x2cd   :  { %v735_v1 = vadd.f32 %v734_v62, %v733_v60 }
 0x2ce   :  { %v730_v2 = vrot.slane %v729_v63, 1 }
 0x2cf   :  { %v736_v3 = vrot.slane %v735_v1, 1 }
 0x2d0   :  { %v731_v4 = vadd.f32 %v730_v2, %v729_v63 }
 0x2d1   :  { %v737_v6 = vadd.f32 %v736_v3, %v735_v1 }
 0x2d2   :  { %v744_v7 = vmul.f32 0.125, %v731_v4 }
 0x2d3   :  { %v745_v47 = vmul.f32 0.125, %v737_v6 }
 0x2d4   :  { %v748_v8 = vadd.f32 1e-05, %v744_v7 }
 0x2d5   :  { %v749_v48 = vadd.f32 1e-05, %v745_v47 }
 0x2d6   :  { %1160 = vrsqrt.f32 %v748_v8 }
 0x2d7   :  { %1162 = vrsqrt.f32 %v749_v48 }
 0x2e0   :  { %v1161_v15 = vpop.eup %1160 }
 0x2e1   :  { %v1163_v19 = vpop.eup %1162 }
 0x2e2   :  { %v757_v16 = vcombine.low %v1161_v15, %v1163_v19 }
 0x2e4   :  { %v764_v50 = vrot.slane %v757_v16, %v1412_v38 }
 0x2e6   :  { %v772_v10 = vcombine.low %v764_v50, %v771_v9 }
 0x2e8   :  { %v779_v13 = vrot.slane %v772_v10, %v1412_v38 }
 0x2ea   :  { %v781_v14 = vmul.f32 %v779_v13, %v747_v12 }
 0x2ec   :  { %v787_v21 = vrot.slane %v781_v14, %v1419_v51  ;;  %v791_v22 = vrot.slane %v781_v14, %v1422_v53  ;;  %v795_v24 = vrot.slane %v781_v14, %v1424_v54 }
 0x2ee   :  { %v799_v26 = vmul.f32 %v787_v21, %v717_v41  ;;  %v800_v27 = vmul.f32 %v791_v22, %v718_v43  ;;  %v801_v28 = vmul.f32 %v795_v24, %v1480_v18  ;;  %v830_v29 = vmul.f32 %v787_v21, %v1484_v23 }
 0x2ef   :  { %v831_v30 = vmul.f32 %v791_v22, %v1487_v25  ;;  %v832_v11 = vmul.f32 %v795_v24, %v1476_v20 }
 0x2f0   :  { %v805_v31 = vcombine.low %v799_v26, %v800_v27  ;;  %v819_v33 = vrot.slane %v801_v28, %v1412_v38 }
 0x2f2   :  { %v812_v32 = vrot.slane %v805_v31, %v1412_v38 }
 0x2f4   :  { %v820_v34 = vcombine.low %v812_v32, %v819_v33 }
 0x2f6   :  { %v827_v36 = vrot.slane %v820_v34, %v1412_v38 }
 0x2f8   :  { %v829_v37 = vsub.f32 %v782_v35, %v827_v36 }
 0x2fa   :  { %v837_v18 = vrot.slane %v829_v37, %v1419_v51  ;;  %v841_v23 = vrot.slane %v829_v37, %v1422_v53  ;;  %v845_v25 = vrot.slane %v829_v37, %v1424_v54 }
 0x2fc   :  { %v849_v17 = vadd.f32 %v837_v18, %v830_v29  ;;  %v850_v39 = vadd.f32 %v841_v23, %v831_v30  ;;  %v1516_v40 = vadd.f32 %v845_v25, %v832_v11 }
 0x2fe   :  { %v852_v41 = vmax.f32 %v849_v17, 0.0  ;;  %v853_v42 = vmax.f32 %v850_v39, 0.0  ;;  %v854_v43 = vmax.f32 %v1516_v40, 0.0 }
 0x2ff   :  { %1260 = dma.done.wait [#allocation4 + $0x1], 3072 }
 0x300   :  { %1261 = vsyncadd [#allocation4 + $0x1], 4294964224  ;;  %v860_v38 = vpack.c.bf16 %v853_v42, %v853_v42  ;;  %v870_v44 = vld [vmem:[#allocation3 + $0x40] sm:$0xff]  ;;  %v871_v45 = vld [vmem:[#allocation3 + $0x48] sm:$0xff]  ;;  %v859_v63 = vpack.c.bf16 %v852_v41, %v852_v41  ;;  %v1281_v0 = vmov 0.0   ;;  %vm1282_vm2 = vmmov 0  }
 0x301   :  { %v862_v20 = vld [vmem:[#allocation3] sm:$0xff]  ;;  %1065 = vmatprep.subr.bf16.mxu1 %v870_v44  ;;  %v863_v51 = vld [vmem:[#allocation3 + $0x8] sm:$0xff]  ;;  %v872_v53 = vld [vmem:[#allocation3 + $0x50] sm:$0xff]  ;;  %v861_v8 = vpack.c.bf16 %v854_v43, %v854_v43  ;;  %s1283_s21 = smov [#allocation10]  }
 0x302   :  { %925 = vmatprep.mubr.bf16.mxu1 %v860_v38  ;;  %1066 = vmatpush3.bf16.msra.mxu1 %v862_v20  ;;  %v864_v54 = vld [vmem:[#allocation3 + $0x10] sm:$0xff]  ;;  %v873_v46 = vld [vmem:[#allocation3 + $0x58] sm:$0xff]  ;;  %v874_v55 = vld [vmem:[#allocation3 + $0x60] sm:$0xff]  ;;  %s981_s22 = sshll.u32 %s1283_s21, 4  ;;  %s982_s22 = int_to_ptr.vmem [resolvable:$true] %s981_s22 }
 0x303   :  { %1067 = vmatprep.subr.bf16.mxu1 %v871_v45  ;;  %v865_v52 = vld [vmem:[#allocation3 + $0x18] sm:$0xff]  ;;  %v866_v56 = vld [vmem:[#allocation3 + $0x20] sm:$0xff]  ;;  %v875_v57 = vld [vmem:[#allocation3 + $0x68] sm:$0xff]  ;;  %s1232_s23 = scalar_lea.vmem %s982_s22, 128  ;;  %p1237_p11 = scmp.lt.s32.totalorder %s982_s22, %s982_s22 }
 0x304   :  { %v867_v58 = vld [vmem:[#allocation3 + $0x28] sm:$0xff]  ;;  %v876_v59 = vld [vmem:[#allocation3 + $0x70] sm:$0xff]  ;;  %v877_v61 = vld [vmem:[#allocation3 + $0x78] sm:$0xff]  ;;  %p1233_p10 = scmp.ne.s32.totalorder %s982_s22, %s1232_s23  ;;  %p1238_p12 = scmp.lt.s32.totalorder %s1232_s23, %s1232_s23 }
 0x305   :  { %v868_v60 = vld [vmem:[#allocation3 + $0x30] sm:$0xff]  ;;  %v869_v62 = vld [vmem:[#allocation3 + $0x38] sm:$0xff]  ;;  %v878_v1 = vld [vmem:[#allocation3 + $0x80] sm:$0xff] }
 0x306   :  { %1068 = vmatpush3.bf16.msra.mxu1 %v863_v51  ;;  %v879_v2 = vld [vmem:[#allocation3 + $0x88] sm:$0xff]  ;;  %v880_v3 = vld [vmem:[#allocation3 + $0x90] sm:$0xff]  ;;  %v881_v4 = vld [vmem:[#allocation3 + $0x98] sm:$0xff]  ;;  %p1239_p13 = por %p1238_p12, %p1237_p11 }
 0x307   :  { %1069 = vmatprep.subr.bf16.mxu1 %v872_v53  ;;  %v882_v5 = vld [vmem:[#allocation3 + $0xa0] sm:$0xff]  ;;  %v883_v6 = vld [vmem:[#allocation3 + $0xa8] sm:$0xff]  ;;  %v884_v7 = vld [vmem:[#allocation3 + $0xb0] sm:$0xff] }
 0x308   :  { %v885_v47 = vld [vmem:[#allocation3 + $0xb8] sm:$0xff]  ;;  %v1018_v50 = vld [vmem:[%s1545_s8] ss:$0 sm:$0xff]  ;;  %p1240_p0 = pnand %p1239_p13, %p1233_p10 }
 0x30a   :  { %1070 = vmatpush3.bf16.msra.mxu1 %v864_v54 }
 0x30b   :  { %1071 = vmatprep.subr.bf16.mxu1 %v873_v46 }
 0x30e   :  { %1072 = vmatpush3.bf16.msra.mxu1 %v865_v52 }
 0x30f   :  { %1073 = vmatprep.subr.bf16.mxu1 %v874_v55 }
 0x312   :  { %1074 = vmatpush3.bf16.msra.mxu1 %v866_v56 }
 0x313   :  { %1075 = vmatprep.subr.bf16.mxu1 %v875_v57 }
 0x316   :  { %1076 = vmatpush3.bf16.msra.mxu1 %v867_v58 }
 0x317   :  { %1077 = vmatprep.subr.bf16.mxu1 %v876_v59 }
 0x31a   :  { %1078 = vmatpush3.bf16.msra.mxu1 %v868_v60 }
 0x31b   :  { %1079 = vmatprep.subr.bf16.mxu1 %v877_v61 }
 0x31e   :  { %1080 = vmatpush3.bf16.msra.mxu1 %v869_v62 }
 0x31f   :  { %1096 = vmatprep.subr.bf16.mxu1 %v1281_v0 }
 0x321   :  { %926 = vmatmul.mubr.bf16.vlgmr.msra.gmra.mrb[12].mxu1 %v859_v63 }
 0x322   :  { %1097 = vmatpush3.bf16.msra.mxu1 %v878_v1  ;;  %1112 = vmatprep.mubr.msk.bf16.mxu1 %vm1282_vm2, %v1281_v0 }
 0x323   :  { %1098 = vmatprep.subr.bf16.mxu1 %v1281_v0 }
 0x326   :  { %1099 = vmatpush3.bf16.msra.mxu1 %v879_v2 }
 0x327   :  { %1100 = vmatprep.subr.bf16.mxu1 %v1281_v0 }
 0x32a   :  { %1101 = vmatpush3.bf16.msra.mxu1 %v880_v3 }
 0x32b   :  { %1102 = vmatprep.subr.bf16.mxu1 %v1281_v0 }
 0x32e   :  { %1103 = vmatpush3.bf16.msra.mxu1 %v881_v4 }
 0x32f   :  { %1104 = vmatprep.subr.bf16.mxu1 %v1281_v0 }
 0x332   :  { %1105 = vmatpush3.bf16.msra.mxu1 %v882_v5 }
 0x333   :  { %1106 = vmatprep.subr.bf16.mxu1 %v1281_v0 }
 0x336   :  { %1107 = vmatpush3.bf16.msra.mxu1 %v883_v6 }
 0x337   :  { %1108 = vmatprep.subr.bf16.mxu1 %v1281_v0 }
 0x33a   :  { %1109 = vmatpush3.bf16.msra.mxu1 %v884_v7 }
 0x33b   :  { %1110 = vmatprep.subr.bf16.mxu1 %v1281_v0 }
 0x33e   :  { %1111 = vmatpush3.bf16.msra.mxu1 %v885_v47 }
 0x341   :  { %1113 = vmatmul.mubr.bf16.vlgmr.msra.gmra.mrb[16].mxu1 %v861_v8 }
 0x3f4   :  { %v1081_v48 = vpop.f32.mrb[12].mxu1 }
 0x3f5   :  { %v1082_v49 = vpop.f32.mrb[13].mxu1 }
 0x3f6   :  { %v1083_v15 = vadd.f32 %v1082_v49, %v1081_v48  ;;  %v1084_v19 = vpop.f32.mrb[14].mxu1 }
 0x3f7   :  { %v1085_v16 = vpop.f32.mrb[15].mxu1 }
 0x3f8   :  { %v928_v9 = vadd.f32 %v1083_v15, %v1018_v50 }
 0x414   :  { %v967_v10 = vpop.f32.mrb[16].mxu1 }
 0x415   :  { %v968_v12 = vadd.f32 %v967_v10, %v928_v9  ;;  %v1114_v13 = vpop.f32.mrb[17].mxu1 }
 0x416   :  { %v970_v14 = vpop.f32.mrb[18].mxu1 }
 0x417   :  { %1164 = vtanh.f32 %v968_v12  ;;  %v1115_v21 = vpop.f32.mrb[19].mxu1 }
 0x421   :  { %v1165_v22 = vpop.eup %1164 }
 0x422   :  { %974 = vst [vmem:[#allocation10] sm:$0xff] %v1165_v22 }
 0x423   :  { %1243 = shalt.err (!%p1240_p0)
}
 0x424   :  { %s1244_s25 = scalar_lea.hbm %s1546_s9, 128 }
 0x425   :  { %p1245_p1 = scmp.ne.s32.totalorder %s1546_s9, %s1244_s25  ;;  %p1248_p2 = scmp.lt.u32.totalorder %s1244_s25, %s1546_s9 }
 0x427   :  { %p1250_p3 = pnand %p1248_p2, %p1245_p1 }
 0x429   :  { %1253 = shalt.err (!%p1250_p3)
}
 0x42a   :  { %984 = dma.vmem_to_hbm [thread:$0]  %s982_s22, 128, %s1546_s9, [#allocation7]  }
 0x42b   :  { %1262 = dma.done.wait [#allocation7], 128  }
 0x42c   :  { %1263 = vsyncadd [#allocation7], 4294967168 }
 0x42d   :  { %988 = vsyncpa [#allocation6], 1 }
 0x42e   :  { %989 = vsyncpa [#allocation9], 1 }
 0x42f   :  { %990 = vsyncpa [#allocation7], 1 }
 0x430   :  { %991 = vsyncmov [#allocation4] }
 0x433   :  { %s992_s0 = vpop.sfrf %991 }
 0x434   :  { %p1019_p4 = scmp.ne.s32.totalorder %s992_s0, 0 }
 0x436   :  { %996 = shalt.err (%p1019_p4)  }
 0x437   :  { %998 = vsyncmov [#allocation4 + $0x1] }
 0x43a   :  { %s999_s10 = vpop.sfrf %998 }
 0x43b   :  { %p1020_p5 = scmp.ne.s32.totalorder %s999_s10, 0 }
 0x43d   :  { %1003 = shalt.err (%p1020_p5)  }

</bundles_post_ra>
